<compile_context>
chip_gen: v7x
topology: tpu7x:2x2x1
jax: 0.10.0
libtpu: 0.0.40
codegen_flags: <defaults>
</compile_context>

<pallas_src>
import jax
import jax.numpy as jnp
from jax.experimental import pallas as pl
from jax.experimental.pallas import tpu as pltpu

IN_FEATURES = 400
HIDDEN = 25
NUM_CLASSES = 10

HIDDEN_PAD = 128   # 25 -> 128 (lane-aligned hidden width)
OUT_PAD = 128      # 10 -> 128 (lane-dense output block)

NEG_BIG = -1e30    # baked into padded b3 lanes; exp() underflows cleanly to 0


def mlp_kernel(x_ref, w1_ref, b1_ref, w2_ref, b2_ref, w3_ref, b3_ref, o_ref):
    # One fused block: three bf16 MXU matmuls (f32 accumulation) + relu + log_softmax.
    x = x_ref[...]                                                      # (tile_b, 400) bf16

    h1 = jnp.dot(x, w1_ref[...], preferred_element_type=jnp.float32) + b1_ref[...]
    h1 = jnp.maximum(h1, 0.0)                                           # f32 (tile_b, 128)

    h2 = jnp.dot(h1.astype(jnp.bfloat16), w2_ref[...],
                 preferred_element_type=jnp.float32) + b2_ref[...]
    h2 = jnp.maximum(h2, 0.0)                                           # f32 (tile_b, 128)

    logits = jnp.dot(h2.astype(jnp.bfloat16), w3_ref[...],
                     preferred_element_type=jnp.float32) + b3_ref[...]  # f32 (tile_b, 128)

    # Padded class lanes already carry -1e30 via b3 (w3 padded columns are zero),
    # so no per-tile masking is needed: they lose the max and exp() to 0 in the sum.
    m = jnp.max(logits, axis=1, keepdims=True)
    shifted = logits - m
    lse = jnp.log(jnp.sum(jnp.exp(shifted), axis=1, keepdims=True))
    o_ref[...] = (shifted - lse).astype(o_ref.dtype)                    # (tile_b, 128)


def prepare_params(params):
    """One-time: pad (in, out)-layout params to lane-aligned shapes, weights in bf16."""
    w1, b1, w2, b2, w3, b3 = params

    def pad2(a, rows, cols, dtype, fill=0.0):
        out = jnp.full((rows, cols), fill, dtype)
        return out.at[: a.shape[0], : a.shape[1]].set(a.astype(dtype))

    w1p = pad2(w1, IN_FEATURES, HIDDEN_PAD, jnp.bfloat16)   # (400, 128)
    b1p = pad2(b1, 1, HIDDEN_PAD, jnp.float32)
    w2p = pad2(w2, HIDDEN_PAD, HIDDEN_PAD, jnp.bfloat16)    # (128, 128)
    b2p = pad2(b2, 1, HIDDEN_PAD, jnp.float32)
    w3p = pad2(w3, HIDDEN_PAD, OUT_PAD, jnp.bfloat16)       # (128, 128)
    # Bake the class mask into b3: padded lanes get -1e30 so they vanish from
    # the log_softmax max/sum without any per-tile masking work in the kernel.
    b3p = pad2(b3, 1, OUT_PAD, jnp.float32, fill=NEG_BIG)
    return (w1p, b1p, w2p, b2p, w3p, b3p)


def net_forward(x, padded_params, *, max_tile_b=512):
    """x: (B, 400) float. Returns (B, 10) log-probabilities (float32)."""
    w1, b1, w2, b2, w3, b3 = padded_params
    B = x.shape[0]

    x = x.astype(jnp.bfloat16)   # halve HBM bytes for the dominant x stream

    # Batch tile: multiple of 8 sublanes, up to max_tile_b rows per grid step.
    # Keep >= 2 grid steps whenever the batch allows it so both v7x TensorCores
    # get work; on v5e/v6e the extra step costs ~0.35 us (negligible).
    b8 = ((B + 7) // 8) * 8
    if b8 <= 8:
        tile_b = b8
    else:
        tile_b = min(max_tile_b, ((pl.cdiv(b8, 2) + 7) // 8) * 8)
    grid_b = pl.cdiv(b8, tile_b)
    b_pad = grid_b * tile_b

    if b_pad != B:
        # Rare batch-only pad (rows of zeros); no K padding of x is ever done.
        x = jnp.zeros((b_pad, IN_FEATURES), x.dtype).at[:B].set(x)

    wspec = lambda shape: pl.BlockSpec(shape, lambda i: (0, 0))  # resident across steps

    out = pl.pallas_call(
        mlp_kernel,
        out_shape=jax.ShapeDtypeStruct((b_pad, OUT_PAD), jnp.float32),
        grid=(grid_b,),
        in_specs=[
            pl.BlockSpec((tile_b, IN_FEATURES), lambda i: (i, 0)),   # x: full 400-lane dim
            wspec((IN_FEATURES, HIDDEN_PAD)), wspec((1, HIDDEN_PAD)),
            wspec((HIDDEN_PAD, HIDDEN_PAD)), wspec((1, HIDDEN_PAD)),
            wspec((HIDDEN_PAD, OUT_PAD)), wspec((1, OUT_PAD)),
        ],
        out_specs=pl.BlockSpec((tile_b, OUT_PAD), lambda i: (i, 0)),
        compiler_params=pltpu.CompilerParams(
            dimension_semantics=("parallel",)   # batch tiles shard across TCs on v7x
        ),
    )(x, w1, b1, w2, b2, w3, b3)

    return out[:B, :NUM_CLASSES]


def init_params(key):
    # Deterministic init mimicking nn.Linear's U(-1/sqrt(fan_in), 1/sqrt(fan_in)),
    # stored directly in (in, out) layout (PyTorch computes x @ W.T + b).
    def linear(key, fan_in, fan_out):
        kw, kb = jax.random.split(key)
        bound = 1.0 / jnp.sqrt(fan_in)
        w = jax.random.uniform(kw, (fan_in, fan_out), jnp.float32, -bound, bound)
        b = jax.random.uniform(kb, (1, fan_out), jnp.float32, -bound, bound)
        return w, b

    k1, k2, k3 = jax.random.split(key, 3)
    w1, b1 = linear(k1, IN_FEATURES, HIDDEN)
    w2, b2 = linear(k2, HIDDEN, HIDDEN)
    w3, b3 = linear(k3, HIDDEN, NUM_CLASSES)
    return (w1, b1, w2, b2, w3, b3)


def reference_forward(x, params):
    # Pure-f32 reference matching the PyTorch module.
    w1, b1, w2, b2, w3, b3 = params
    h1 = jnp.maximum(x @ w1 + b1, 0.0)
    h2 = jnp.maximum(h1 @ w2 + b2, 0.0)
    logits = h2 @ w3 + b3
    return jax.nn.log_softmax(logits, axis=1)


if __name__ == "__main__":
    key = jax.random.PRNGKey(0)
    kx, kp = jax.random.split(key)
    batch = 8
    x = jax.random.normal(kx, (batch, IN_FEATURES), jnp.float32)

    params = init_params(kp)
    padded_params = prepare_params(params)   # pad + bf16-cast weights once, reuse

    out = jax.block_until_ready(net_forward(x, padded_params))
    ref = reference_forward(x, params)

    assert out.shape == (batch, NUM_CLASSES)
    assert bool(jnp.all(jnp.isfinite(out)))
    # bf16 MXU operands -> loosened tolerance vs the pure-f32 reference.
    assert jnp.allclose(out, ref, atol=5e-2, rtol=5e-2), float(jnp.max(jnp.abs(out - ref)))
    # Exact log_softmax property (independent of matmul precision): probs sum to 1.
    assert jnp.allclose(jnp.sum(jnp.exp(out), axis=1), 1.0, atol=1e-4)
    print("KERNEL_OK")
</pallas_src>

<mosaic_0001>
module attributes {stable_mosaic.version = 11 : i64} {
  func.func @mlp_kernel(%arg0: i32, %arg1: memref<8x400xbf16, #tpu.memory_space<vmem>>, %arg2: memref<400x128xbf16, #tpu.memory_space<vmem>>, %arg3: memref<1x128xf32, #tpu.memory_space<vmem>>, %arg4: memref<128x128xbf16, #tpu.memory_space<vmem>>, %arg5: memref<1x128xf32, #tpu.memory_space<vmem>>, %arg6: memref<128x128xbf16, #tpu.memory_space<vmem>>, %arg7: memref<1x128xf32, #tpu.memory_space<vmem>>, %arg8: memref<8x128xf32, #tpu.memory_space<vmem>>) attributes {dimension_semantics = [#tpu.dimension_semantics<parallel>], iteration_bounds = array<i64: 1>, scalar_prefetch = 0 : i64, scratch_operands = 0 : i64, tpu.core_type = #tpu.core_type<tc>, window_params = [{transform_indices = @transform_0, window_bounds = array<i64: 8, 400>}, {pipeline_mode = #tpu.pipeline_mode<synchronous>, transform_indices = @transform_1, window_bounds = array<i64: 400, 128>}, {pipeline_mode = #tpu.pipeline_mode<synchronous>, transform_indices = @transform_2, window_bounds = array<i64: 1, 128>}, {pipeline_mode = #tpu.pipeline_mode<synchronous>, transform_indices = @transform_3, window_bounds = array<i64: 128, 128>}, {pipeline_mode = #tpu.pipeline_mode<synchronous>, transform_indices = @transform_4, window_bounds = array<i64: 1, 128>}, {pipeline_mode = #tpu.pipeline_mode<synchronous>, transform_indices = @transform_5, window_bounds = array<i64: 128, 128>}, {pipeline_mode = #tpu.pipeline_mode<synchronous>, transform_indices = @transform_6, window_bounds = array<i64: 1, 128>}, {transform_indices = @transform_7, window_bounds = array<i64: 8, 128>}]} {
    %c0 = arith.constant 0 : index
    %c0_0 = arith.constant 0 : index
    %0 = vector.load %arg1[%c0, %c0_0] : memref<8x400xbf16, #tpu.memory_space<vmem>>, vector<8x400xbf16>
    %c0_1 = arith.constant 0 : index
    %c0_2 = arith.constant 0 : index
    %1 = vector.load %arg2[%c0_1, %c0_2] : memref<400x128xbf16, #tpu.memory_space<vmem>>, vector<400x128xbf16>
    %cst = arith.constant dense<0.000000e+00> : vector<8x128xf32>
    %2 = tpu.matmul %0, %1, %cst {dimension_numbers = #tpu.dot_dimension_numbers<[1], [0], [0], [1], [0, 0, 1, 1], [], []>} : vector<8x400xbf16>, vector<400x128xbf16>, vector<8x128xf32> -> vector<8x128xf32>
    %c0_3 = arith.constant 0 : index
    %c0_4 = arith.constant 0 : index
    %3 = vector.load %arg3[%c0_3, %c0_4] : memref<1x128xf32, #tpu.memory_space<vmem>>, vector<1x128xf32>
    %4 = vector.broadcast %3 : vector<1x128xf32> to vector<8x128xf32>
    %5 = arith.addf %2, %4 : vector<8x128xf32>
    %cst_5 = arith.constant 0.000000e+00 : f32
    %6 = vector.broadcast %cst_5 : f32 to vector<8x128xf32>
    %7 = arith.maximumf %5, %6 : vector<8x128xf32>
    %8 = arith.truncf %7 : vector<8x128xf32> to vector<8x128xbf16>
    %c0_6 = arith.constant 0 : index
    %c0_7 = arith.constant 0 : index
    %9 = vector.load %arg4[%c0_6, %c0_7] : memref<128x128xbf16, #tpu.memory_space<vmem>>, vector<128x128xbf16>
    %cst_8 = arith.constant dense<0.000000e+00> : vector<8x128xf32>
    %10 = tpu.matmul %8, %9, %cst_8 {dimension_numbers = #tpu.dot_dimension_numbers<[1], [0], [0], [1], [0, 0, 1, 1], [], []>} : vector<8x128xbf16>, vector<128x128xbf16>, vector<8x128xf32> -> vector<8x128xf32>
    %c0_9 = arith.constant 0 : index
    %c0_10 = arith.constant 0 : index
    %11 = vector.load %arg5[%c0_9, %c0_10] : memref<1x128xf32, #tpu.memory_space<vmem>>, vector<1x128xf32>
    %12 = vector.broadcast %11 : vector<1x128xf32> to vector<8x128xf32>
    %13 = arith.addf %10, %12 : vector<8x128xf32>
    %cst_11 = arith.constant 0.000000e+00 : f32
    %14 = vector.broadcast %cst_11 : f32 to vector<8x128xf32>
    %15 = arith.maximumf %13, %14 : vector<8x128xf32>
    %16 = arith.truncf %15 : vector<8x128xf32> to vector<8x128xbf16>
    %c0_12 = arith.constant 0 : index
    %c0_13 = arith.constant 0 : index
    %17 = vector.load %arg6[%c0_12, %c0_13] : memref<128x128xbf16, #tpu.memory_space<vmem>>, vector<128x128xbf16>
    %cst_14 = arith.constant dense<0.000000e+00> : vector<8x128xf32>
    %18 = tpu.matmul %16, %17, %cst_14 {dimension_numbers = #tpu.dot_dimension_numbers<[1], [0], [0], [1], [0, 0, 1, 1], [], []>} : vector<8x128xbf16>, vector<128x128xbf16>, vector<8x128xf32> -> vector<8x128xf32>
    %c0_15 = arith.constant 0 : index
    %c0_16 = arith.constant 0 : index
    %19 = vector.load %arg7[%c0_15, %c0_16] : memref<1x128xf32, #tpu.memory_space<vmem>>, vector<1x128xf32>
    %20 = vector.broadcast %19 : vector<1x128xf32> to vector<8x128xf32>
    %21 = arith.addf %18, %20 : vector<8x128xf32>
    %cst_17 = arith.constant dense<0xFF800000> : vector<8xf32>
    %22 = vector.multi_reduction <maximumf>, %21, %cst_17 [1] : vector<8x128xf32> to vector<8xf32>
    %23 = vector.shape_cast %22 : vector<8xf32> to vector<8x1xf32>
    %24 = vector.broadcast %23 : vector<8x1xf32> to vector<8x128xf32>
    %25 = arith.subf %21, %24 : vector<8x128xf32>
    %26 = math.exp %25 : vector<8x128xf32>
    %cst_18 = arith.constant dense<0.000000e+00> : vector<8xf32>
    %27 = vector.multi_reduction <add>, %26, %cst_18 [1] : vector<8x128xf32> to vector<8xf32>
    %28 = vector.shape_cast %27 : vector<8xf32> to vector<8x1xf32>
    %29 = math.log %28 : vector<8x1xf32>
    %30 = vector.broadcast %29 : vector<8x1xf32> to vector<8x128xf32>
    %31 = arith.subf %25, %30 : vector<8x128xf32>
    %c0_19 = arith.constant 0 : index
    %c0_20 = arith.constant 0 : index
    %32 = vector.load %arg8[%c0_19, %c0_20] : memref<8x128xf32, #tpu.memory_space<vmem>>, vector<8x128xf32>
    tpu.vector_store %arg8[%c0_19, %c0_20], %31 {strides = array<i32>} : memref<8x128xf32, #tpu.memory_space<vmem>>, vector<8x128xf32>,
    return
  }
  func.func @transform_0(%arg0: i32) -> (i32, i32) {
    %c0_i32 = arith.constant 0 : i32
    %c0_i32_0 = arith.constant 0 : i32
    return %arg0, %c0_i32 : i32, i32
  }
  func.func @transform_1(%arg0: i32) -> (i32, i32) {
    %c0_i32 = arith.constant 0 : i32
    %c0_i32_0 = arith.constant 0 : i32
    %c0_i32_1 = arith.constant 0 : i32
    return %c0_i32, %c0_i32_0 : i32, i32
  }
  func.func @transform_2(%arg0: i32) -> (i32, i32) {
    %c0_i32 = arith.constant 0 : i32
    %c0_i32_0 = arith.constant 0 : i32
    %c0_i32_1 = arith.constant 0 : i32
    return %c0_i32, %c0_i32_0 : i32, i32
  }
  func.func @transform_3(%arg0: i32) -> (i32, i32) {
    %c0_i32 = arith.constant 0 : i32
    %c0_i32_0 = arith.constant 0 : i32
    %c0_i32_1 = arith.constant 0 : i32
    return %c0_i32, %c0_i32_0 : i32, i32
  }
  func.func @transform_4(%arg0: i32) -> (i32, i32) {
    %c0_i32 = arith.constant 0 : i32
    %c0_i32_0 = arith.constant 0 : i32
    %c0_i32_1 = arith.constant 0 : i32
    return %c0_i32, %c0_i32_0 : i32, i32
  }
  func.func @transform_5(%arg0: i32) -> (i32, i32) {
    %c0_i32 = arith.constant 0 : i32
    %c0_i32_0 = arith.constant 0 : i32
    %c0_i32_1 = arith.constant 0 : i32
    return %c0_i32, %c0_i32_0 : i32, i32
  }
  func.func @transform_6(%arg0: i32) -> (i32, i32) {
    %c0_i32 = arith.constant 0 : i32
    %c0_i32_0 = arith.constant 0 : i32
    %c0_i32_1 = arith.constant 0 : i32
    return %c0_i32, %c0_i32_0 : i32, i32
  }
  func.func @transform_7(%arg0: i32) -> (i32, i32) {
    %c0_i32 = arith.constant 0 : i32
    %c0_i32_0 = arith.constant 0 : i32
    return %arg0, %c0_i32 : i32, i32
  }
}

</mosaic_0001>

<bundles_post_ra>
// kernel: tpu_custom_call.1
= control target key start
LH: loop header
LB: loop body
LE: loop exit
PB: predicated region body
PF: predicated region fallthrough
CT: control target
= control target key end

     0   :  { %12 = vsyncpa [#allocation3], 0  ;;  %s1102_s0 = inlined_call_operand.hbm [shape: bf16[8,400], index: 0, kind: input, shape index: {}]   ;;  %s1103_s1 = inlined_call_operand.hbm [shape: bf16[400,128], index: 1, kind: input, shape index: {}]   ;;  %s1104_s2 = inlined_call_operand.vmem [shape: f32[1,128], index: 2, kind: input, shape index: {}]   ;;  %s1105_s3 = inlined_call_operand.hbm [shape: bf16[128,128], index: 3, kind: input, shape index: {}]   ;;  %s1106_s4 = inlined_call_operand.vmem [shape: f32[1,128], index: 4, kind: input, shape index: {}]   ;;  %s1107_s5 = inlined_call_operand.hbm [shape: bf16[128,128], index: 5, kind: input, shape index: {}]   ;;  %s1108_s6 = inlined_call_operand.vmem [shape: f32[1,128], index: 6, kind: input, shape index: {}]   ;;  %s1109_s7 = inlined_call_operand.hbm [shape: f32[8,128], index: 7, kind: output, shape index: {}]  }
   0x1   :  { %13 = vsyncpa [#allocation6], 0 }
   0x2   :  { %14 = vsyncpa [#allocation9], 0 }
   0x3   :  { %15 = vsyncpa [#allocation4], 0  ;;  %s947_s24 = smov [#allocation5]   ;;  %s829_s28 = scalar_lea.hbm %s1103_s1, 3200 }
   0x4   :  { %s31_s25 = sshll.u32 %s947_s24, 4  ;;  %p830_p0 = scmp.ne.s32.totalorder %s1103_s1, %s829_s28  ;;  %s32_s25 = int_to_ptr.vmem [resolvable:$true] %s31_s25 }
   0x5   :  { %p833_p1 = scmp.lt.u32.totalorder %s829_s28, %s1103_s1 }
   0x7   :  { %p835_p2 = pnand %p833_p1, %p830_p0 }
   0x9   :  { %838 = shalt.err (!%p835_p2)
}
   0xa   :  { %s839_s10 = scalar_lea.vmem %s32_s25, 3200  ;;  %p844_p4 = scmp.lt.s32.totalorder %s32_s25, %s32_s25 }
   0xb   :  { %p840_p3 = scmp.ne.s32.totalorder %s32_s25, %s839_s10  ;;  %p845_p5 = scmp.lt.s32.totalorder %s839_s10, %s839_s10 }
   0xd   :  { %p846_p6 = por %p845_p5, %p844_p4 }
   0xf   :  { %p847_p7 = pnand %p846_p6, %p840_p3 }
  0x11   :  { %850 = shalt.err (!%p847_p7)
}
  0x12   :  { %s948_s11 = smov 64   ;;  %s949_s12 = smov 4  }
  0x13   :  { %37 = dma.hbm_to_vmem [thread:$0]  %s1103_s1, 3200, %s32_s25, [#allocation6], %s948_s11, %s948_s11, %s949_s12  }
  0x14   :  { %s950_s15 = smov [#allocation2]   ;;  %s951_s17 = smov [#allocation7]  }
  0x15   :  { %s22_s16 = sshll.u32 %s950_s15, 4  ;;  %s45_s18 = sshll.u32 %s951_s17, 4  ;;  %s23_s16 = int_to_ptr.vmem [resolvable:$true] %s22_s16  ;;  %s46_s18 = int_to_ptr.vmem [resolvable:$true] %s45_s18 }
  0x16   :  { %s851_s21 = scalar_lea.hbm %s1102_s0, 256 }
  0x17   :  { %p852_p8 = scmp.ne.s32.totalorder %s1102_s0, %s851_s21  ;;  %p855_p9 = scmp.lt.u32.totalorder %s851_s21, %s1102_s0 }
  0x19   :  { %p857_p10 = pnand %p855_p9, %p852_p8 }
  0x1b   :  { %860 = shalt.err (!%p857_p10)
}
  0x1c   :  { %s861_s1 = scalar_lea.vmem %s23_s16, 256  ;;  %p866_p12 = scmp.lt.s32.totalorder %s23_s16, %s23_s16 }
  0x1d   :  { %p862_p11 = scmp.ne.s32.totalorder %s23_s16, %s861_s1  ;;  %p867_p13 = scmp.lt.s32.totalorder %s861_s1, %s861_s1 }
  0x1f   :  { %p868_p0 = por %p867_p13, %p866_p12 }
  0x21   :  { %p869_p1 = pnand %p868_p0, %p862_p11 }
  0x23   :  { %872 = shalt.err (!%p869_p1)
}
  0x24   :  { %25 = dma.hbm_to_vmem [thread:$0]  %s1102_s0, 256, %s23_s16, [#allocation3]  }
  0x25   :  { %s873_s30 = scalar_lea.hbm %s1105_s3, 1024 }
  0x26   :  { %p874_p2 = scmp.ne.s32.totalorder %s1105_s3, %s873_s30  ;;  %p877_p3 = scmp.lt.u32.totalorder %s873_s30, %s1105_s3 }
  0x28   :  { %p879_p4 = pnand %p877_p3, %p874_p2 }
  0x2a   :  { %882 = shalt.err (!%p879_p4)
}
  0x2b   :  { %s883_s14 = scalar_lea.vmem %s46_s18, 1024  ;;  %p888_p6 = scmp.lt.s32.totalorder %s46_s18, %s46_s18 }
  0x2c   :  { %p884_p5 = scmp.ne.s32.totalorder %s46_s18, %s883_s14  ;;  %p889_p7 = scmp.lt.s32.totalorder %s883_s14, %s883_s14 }
  0x2e   :  { %p890_p8 = por %p889_p7, %p888_p6 }
  0x30   :  { %p891_p9 = pnand %p890_p8, %p884_p5 }
  0x32   :  { %894 = shalt.err (!%p891_p9)
}
  0x33   :  { %51 = dma.hbm_to_vmem [thread:$0]  %s1105_s3, 1024, %s46_s18, [#allocation6], %s948_s11, %s948_s11, %s949_s12  }
  0x34   :  { %s952_s16 = smov [#allocation8]   ;;  %s895_s21 = scalar_lea.hbm %s1107_s5, 1024 }
  0x35   :  { %s59_s17 = sshll.u32 %s952_s16, 4  ;;  %p896_p10 = scmp.ne.s32.totalorder %s1107_s5, %s895_s21  ;;  %s60_s17 = int_to_ptr.vmem [resolvable:$true] %s59_s17 }
  0x36   :  { %p899_p11 = scmp.lt.u32.totalorder %s895_s21, %s1107_s5 }
  0x38   :  { %p901_p12 = pnand %p899_p11, %p896_p10 }
  0x3a   :  { %904 = shalt.err (!%p901_p12)
}
  0x3b   :  { %s905_s1 = scalar_lea.vmem %s60_s17, 1024  ;;  %p910_p0 = scmp.lt.s32.totalorder %s60_s17, %s60_s17 }
  0x3c   :  { %p906_p13 = scmp.ne.s32.totalorder %s60_s17, %s905_s1  ;;  %p911_p1 = scmp.lt.s32.totalorder %s905_s1, %s905_s1 }
  0x3e   :  { %p912_p2 = por %p911_p1, %p910_p0 }
  0x40   :  { %p913_p3 = pnand %p912_p2, %p906_p13 }
  0x42   :  { %916 = shalt.err (!%p913_p3)
}
  0x43   :  { %65 = dma.hbm_to_vmem [thread:$0]  %s1107_s5, 1024, %s60_s17, [#allocation9], %s948_s11, %s948_s11, %s949_s12  }
  0x44   :  { %939 = dma.done.wait [#allocation3], 256  }
  0x45   :  { %940 = vsyncadd [#allocation3], 4294967040 }
  0x46   :  { %941 = dma.done.wait [#allocation6], 4224  }
  0x47   :  { %942 = vsyncadd [#allocation6], 4294963072 }
  0x48   :  { %943 = dma.done.wait [#allocation9], 1024  }
  0x49   :  { %944 = vsyncadd [#allocation9], 4294966272  ;;  %v953_v0 = vmov 0   ;;  %v780_v1 = vld [vmem:[#allocation5 + $0x40] sm:$0xff]   ;;  %v783_v4 = vld [vmem:[#allocation5 + $0x48] sm:$0xff]   ;;  %vm303_vm0 = vcmask 130048  }
  0x4a   :  { %347 = vmatprep.subr.bf16.mxu1 %v953_v0  ;;  %v781_v2 = vld [vmem:[#allocation5 + $0x80] sm:$0xff]   ;;  %690 = vmatprep.subr.bf16.mxu0 %v780_v1  ;;  %v784_v5 = vld [vmem:[#allocation5 + $0x88] sm:$0xff]   ;;  %v786_v7 = vld [vmem:[#allocation5 + $0x50] sm:$0xff]   ;;  %v954_v32 = vmov 0.0   ;;  %vm955_vm1 = vmmov 0  }
  0x4b   :  { %v782_v3 = vld [vmem:[#allocation5] sm:$0xff]   ;;  %348 = vmatpush1.bf16.msra.mxu1 %v781_v2  ;;  %v785_v6 = vld [vmem:[#allocation5 + $0x8] sm:$0xff]   ;;  %v787_v8 = vld [vmem:[#allocation5 + $0x90] sm:$0xff]  }
  0x4c   :  { %691 = vmatpush3.bf16.msra.mxu0 %v782_v3  ;;  %349 = vmatprep.subr.bf16.mxu1 %v953_v0  ;;  %v788_v9 = vld [vmem:[#allocation5 + $0x10] sm:$0xff]   ;;  %v789_v10 = vld [vmem:[#allocation5 + $0x58] sm:$0xff]   ;;  %v792_v13 = vld [vmem:[#allocation5 + $0x60] sm:$0xff]  }
  0x4d   :  { %692 = vmatprep.subr.bf16.mxu0 %v783_v4  ;;  %v790_v11 = vld [vmem:[#allocation5 + $0x98] sm:$0xff]   ;;  %v793_v14 = vld [vmem:[#allocation5 + $0xa0] sm:$0xff]   ;;  %v795_v16 = vld [vmem:[#allocation5 + $0x68] sm:$0xff]  }
  0x4e   :  { %v791_v12 = vld [vmem:[#allocation5 + $0x18] sm:$0xff]   ;;  %v794_v15 = vld [vmem:[#allocation5 + $0x20] sm:$0xff]   ;;  %v796_v17 = vld [vmem:[#allocation5 + $0xa8] sm:$0xff]  }
  0x4f   :  { %350 = vmatpush1.bf16.msra.mxu1 %v784_v5  ;;  %v797_v18 = vld [vmem:[#allocation5 + $0x28] sm:$0xff]   ;;  %v798_v19 = vld [vmem:[#allocation5 + $0x70] sm:$0xff]   ;;  %v801_v23 = vld [vmem:[#allocation5 + $0x78] sm:$0xff]  }
  0x50   :  { %693 = vmatpush3.bf16.msra.mxu0 %v785_v6  ;;  %351 = vmatprep.subr.bf16.mxu1 %v953_v0  ;;  %v799_v20 = vld [vmem:[#allocation5 + $0xb0] sm:$0xff]   ;;  %v82_v25 = vld [vmem:[#allocation2 + $0x8] sm:$0xff]  ;;  %v806_v29 = vld [vmem:[#allocation5 + $0xc0] sm:$0xff]  }
  0x51   :  { %694 = vmatprep.subr.bf16.mxu0 %v786_v7  ;;  %v800_v21 = vld [vmem:[#allocation5 + $0x30] sm:$0xff]   ;;  %v645_v26 = vcombine.high %v82_v25, %v82_v25  ;;  %v802_v27 = vld [vmem:[#allocation5 + $0xb8] sm:$0xff]   ;;  %v809_v30 = vld [vmem:[#allocation7] sm:$0xff]   ;;  %v644_v33 = vcombine.low %v82_v25, %v82_v25 }
  0x52   :  { %v81_v22 = vld [vmem:[#allocation2] sm:$0xff]  ;;  %v803_v28 = vld [vmem:[#allocation5 + $0x38] sm:$0xff]   ;;  %v812_v36 = vld [vmem:[#allocation7 + $0x18] sm:$0xff]  }
  0x53   :  { %352 = vmatpush1.bf16.msra.mxu1 %v787_v8  ;;  %v643_v24 = vcombine.high %v81_v22, %v81_v22  ;;  %671 = vmatprep.mubr.msk.bf16.mxu1 %vm303_vm0, %v645_v26  ;;  %v642_v31 = vcombine.low %v81_v22, %v81_v22  ;;  %v810_v34 = vld [vmem:[#allocation7 + $0x8] sm:$0xff]   ;;  %v811_v35 = vld [vmem:[#allocation7 + $0x10] sm:$0xff]   ;;  %v813_v37 = vld [vmem:[#allocation7 + $0x20] sm:$0xff]  }
  0x54   :  { %695 = vmatpush3.bf16.msra.mxu0 %v788_v9  ;;  %353 = vmatprep.subr.bf16.mxu1 %v953_v0  ;;  %v814_v38 = vld [vmem:[#allocation7 + $0x28] sm:$0xff]   ;;  %v815_v39 = vld [vmem:[#allocation7 + $0x30] sm:$0xff]   ;;  %v816_v40 = vld [vmem:[#allocation7 + $0x38] sm:$0xff]  }
  0x55   :  { %696 = vmatprep.subr.bf16.mxu0 %v789_v10  ;;  %339 = vmatprep.mubr.bf16.mxu0 %v643_v24  ;;  %v817_v41 = vld [vmem:[#allocation8] sm:$0xff]   ;;  %v818_v42 = vld [vmem:[#allocation8 + $0x8] sm:$0xff]   ;;  %v819_v43 = vld [vmem:[#allocation8 + $0x10] sm:$0xff]  }
  0x56   :  { %v820_v44 = vld [vmem:[#allocation8 + $0x18] sm:$0xff]   ;;  %v821_v45 = vld [vmem:[#allocation8 + $0x20] sm:$0xff]   ;;  %v822_v46 = vld [vmem:[#allocation8 + $0x28] sm:$0xff]  }
  0x57   :  { %354 = vmatpush1.bf16.msra.mxu1 %v790_v11  ;;  %v641_v49 = vld [vmem:[%s1104_s2] ss:$0 sm:$0xff]  ;;  %v823_v61 = vld [vmem:[#allocation8 + $0x30] sm:$0xff]   ;;  %v824_v62 = vld [vmem:[#allocation8 + $0x38] sm:$0xff]  }
  0x58   :  { %697 = vmatpush3.bf16.msra.mxu0 %v791_v12  ;;  %355 = vmatprep.subr.bf16.mxu1 %v953_v0  ;;  %v672_v63 = vld [vmem:[%s1106_s4] ss:$0 sm:$0xff]  ;;  %s956_s4 = smov [#allocation10]  }
  0x59   :  { %698 = vmatprep.subr.bf16.mxu0 %v792_v13  ;;  %v681_v7 = vld [vmem:[%s1108_s6] ss:$0 sm:$0xff]  ;;  %s630_s28 = sshll.u32 %s956_s4, 4  ;;  %s631_s28 = int_to_ptr.vmem [resolvable:$true] %s630_s28 }
  0x5a   :  { %s917_s6 = scalar_lea.vmem %s631_s28, 128  ;;  %p922_p5 = scmp.lt.s32.totalorder %s631_s28, %s631_s28 }
  0x5b   :  { %356 = vmatpush1.bf16.msra.mxu1 %v793_v14  ;;  %p918_p4 = scmp.ne.s32.totalorder %s631_s28, %s917_s6  ;;  %p923_p6 = scmp.lt.s32.totalorder %s917_s6, %s917_s6 }
  0x5c   :  { %699 = vmatpush3.bf16.msra.mxu0 %v794_v15  ;;  %357 = vmatprep.subr.bf16.mxu1 %v953_v0 }
  0x5d   :  { %700 = vmatprep.subr.bf16.mxu0 %v795_v16  ;;  %p924_p7 = por %p923_p6, %p922_p5 }
  0x5f   :  { %358 = vmatpush1.bf16.msra.mxu1 %v796_v17  ;;  %p925_p8 = pnand %p924_p7, %p918_p4 }
  0x60   :  { %701 = vmatpush3.bf16.msra.mxu0 %v797_v18  ;;  %359 = vmatprep.subr.bf16.mxu1 %v953_v0 }
  0x61   :  { %702 = vmatprep.subr.bf16.mxu0 %v798_v19 }
  0x63   :  { %360 = vmatpush1.bf16.msra.mxu1 %v799_v20 }
  0x64   :  { %703 = vmatpush3.bf16.msra.mxu0 %v800_v21  ;;  %361 = vmatprep.subr.bf16.mxu1 %v953_v0 }
  0x65   :  { %704 = vmatprep.subr.bf16.mxu0 %v801_v23 }
  0x67   :  { %362 = vmatpush1.bf16.msra.mxu1 %v802_v27 }
  0x68   :  { %705 = vmatpush3.bf16.msra.mxu0 %v803_v28  ;;  %363 = vmatprep.subr.bf16.mxu1 %v953_v0 }
  0x69   :  { %730 = vmatprep.subr.bf16.mxu0 %v954_v32 }
  0x6b   :  { %340 = vmatmul.mubr.bf16.vlgmr.msra.gmra.mrb[0].mxu0 %v642_v31  ;;  %364 = vmatpush1.bf16.msra.mxu1 %v806_v29 }
  0x6c   :  { %731 = vmatpush3.bf16.msra.mxu0 %v809_v30  ;;  %750 = vmatprep.subr.bf16.mxu1 %v954_v32 }
  0x6d   :  { %732 = vmatprep.subr.bf16.mxu0 %v954_v32  ;;  %746 = vmatprep.mubr.msk.bf16.mxu0 %vm955_vm1, %v954_v32 }
  0x6e   :  { %380 = vmatmul.mubr.bf16.vlgmr.msra.gmra.mrb[0].mxu1 %v644_v33 }
  0x6f   :  { %766 = vmatprep.mubr.msk.bf16.mxu1 %vm955_vm1, %v954_v32  ;;  %751 = vmatpush3.bf16.msra.mxu1 %v817_v41 }
  0x70   :  { %733 = vmatpush3.bf16.msra.mxu0 %v810_v34  ;;  %752 = vmatprep.subr.bf16.mxu1 %v954_v32 }
  0x71   :  { %734 = vmatprep.subr.bf16.mxu0 %v954_v32 }
  0x73   :  { %753 = vmatpush3.bf16.msra.mxu1 %v818_v42 }
  0x74   :  { %735 = vmatpush3.bf16.msra.mxu0 %v811_v35  ;;  %754 = vmatprep.subr.bf16.mxu1 %v954_v32 }
  0x75   :  { %736 = vmatprep.subr.bf16.mxu0 %v954_v32 }
  0x77   :  { %755 = vmatpush3.bf16.msra.mxu1 %v819_v43 }
  0x78   :  { %737 = vmatpush3.bf16.msra.mxu0 %v812_v36  ;;  %756 = vmatprep.subr.bf16.mxu1 %v954_v32 }
  0x79   :  { %738 = vmatprep.subr.bf16.mxu0 %v954_v32 }
  0x7b   :  { %757 = vmatpush3.bf16.msra.mxu1 %v820_v44 }
  0x7c   :  { %739 = vmatpush3.bf16.msra.mxu0 %v813_v37  ;;  %758 = vmatprep.subr.bf16.mxu1 %v954_v32 }
  0x7d   :  { %740 = vmatprep.subr.bf16.mxu0 %v954_v32 }
  0x7f   :  { %759 = vmatpush3.bf16.msra.mxu1 %v821_v45 }
  0x80   :  { %741 = vmatpush3.bf16.msra.mxu0 %v814_v38  ;;  %760 = vmatprep.subr.bf16.mxu1 %v954_v32 }
  0x81   :  { %742 = vmatprep.subr.bf16.mxu0 %v954_v32 }
  0x83   :  { %761 = vmatpush3.bf16.msra.mxu1 %v822_v46 }
  0x84   :  { %743 = vmatpush3.bf16.msra.mxu0 %v815_v39  ;;  %762 = vmatprep.subr.bf16.mxu1 %v954_v32 }
  0x85   :  { %744 = vmatprep.subr.bf16.mxu0 %v954_v32 }
  0x87   :  { %763 = vmatpush3.bf16.msra.mxu1 %v823_v61 }
  0x88   :  { %745 = vmatpush3.bf16.msra.mxu0 %v816_v40  ;;  %764 = vmatprep.subr.bf16.mxu1 %v954_v32 }
  0x8b   :  { %765 = vmatpush3.bf16.msra.mxu1 %v824_v62 }
 0x13e   :  { %v706_v47 = vpop.f32.mrb[0].mxu0 }
 0x13f   :  { %v707_v48 = vpop.f32.mrb[1].mxu0 }
 0x140   :  { %v708_v50 = vadd.f32 %v707_v48, %v706_v47  ;;  %v709_v51 = vpop.f32.mrb[2].mxu0 }
 0x141   :  { %v710_v52 = vpop.f32.mrb[3].mxu0  ;;  %v381_v53 = vpop.f32.mrb[0].mxu1 }
 0x142   :  { %v342_v54 = vadd.f32 %v708_v50, %v641_v49  ;;  %v383_v55 = vpop.f32.mrb[1].mxu1 }
 0x143   :  { %v384_v56 = vpop.f32.mrb[2].mxu1 }
 0x144   :  { %v382_v57 = vadd.f32 %v381_v53, %v342_v54  ;;  %v385_v58 = vpop.f32.mrb[3].mxu1 }
 0x146   :  { %v387_v59 = vmax.f32 %v382_v57, 0.0 }
 0x148   :  { %v388_v60 = vpack.c.bf16 %v387_v59, %v387_v59 }
 0x14a   :  { %747 = vmatmul.mubr.bf16.vlgmr.msra.gmra.mrb[4].mxu0 %v388_v60 }
 0x21d   :  { %v494_v0 = vpop.f32.mrb[4].mxu0 }
 0x21e   :  { %v495_v1 = vadd.f32 %v672_v63, %v494_v0  ;;  %v748_v2 = vpop.f32.mrb[5].mxu0 }
 0x21f   :  { %v497_v3 = vpop.f32.mrb[6].mxu0 }
 0x220   :  { %v500_v4 = vmax.f32 %v495_v1, 0.0  ;;  %v749_v5 = vpop.f32.mrb[7].mxu0 }
 0x222   :  { %v501_v6 = vpack.c.bf16 %v500_v4, %v500_v4 }
 0x224   :  { %767 = vmatmul.mubr.bf16.vlgmr.msra.gmra.mrb[4].mxu1 %v501_v6 }
 0x2f7   :  { %v607_v8 = vpop.f32.mrb[4].mxu1 }
 0x2f8   :  { %v608_v9 = vadd.f32 %v681_v7, %v607_v8  ;;  %v768_v10 = vpop.f32.mrb[5].mxu1 }
 0x2f9   :  { %v610_v11 = vpop.f32.mrb[6].mxu1 }
 0x2fa   :  { %613 = vmax.xlane.f32.xlu0 %v608_v9  ;;  %v769_v12 = vpop.f32.mrb[7].mxu1 }
 0x387   :  { %v614_v13 = vpop.xlane.xlu0 %613 }
 0x388   :  { %v615_v14 = vsub.f32 %v608_v9, %v614_v13 }
 0x38a   :  { %v616_v15 = vmul.f32 1.442695, %v615_v14 }
 0x38c   :  { %825 = vpow2.f32 %v616_v15 }
 0x396   :  { %v826_v16 = vpop.eup %825 }
 0x397   :  { %618 = vadd.xlane.f32.xlu0 %v826_v16 }
 0x424   :  { %v619_v17 = vpop.xlane.xlu0 %618 }
 0x425   :  { %827 = vlog2.f32 %v619_v17 }
 0x42f   :  { %v828_v18 = vpop.eup %827 }
 0x430   :  { %v621_v19 = vmul.f32 0.6931472, %v828_v18 }
 0x432   :  { %v622_v20 = vsub.f32 %v615_v14, %v621_v19 }
 0x434   :  { %623 = vst [vmem:[#allocation10] sm:$0xff] %v622_v20 }
 0x435   :  { %928 = shalt.err (!%p925_p8)
}
 0x436   :  { %s929_s8 = scalar_lea.hbm %s1109_s7, 128 }
 0x437   :  { %p930_p9 = scmp.ne.s32.totalorder %s1109_s7, %s929_s8  ;;  %p933_p10 = scmp.lt.u32.totalorder %s929_s8, %s1109_s7 }
 0x439   :  { %p935_p11 = pnand %p933_p10, %p930_p9 }
 0x43b   :  { %938 = shalt.err (!%p935_p11)
}
 0x43c   :  { %633 = dma.vmem_to_hbm [thread:$0]  %s631_s28, 128, %s1109_s7, [#allocation4]  }
 0x43d   :  { %945 = dma.done.wait [#allocation4], 128  }
 0x43e   :  { %946 = vsyncadd [#allocation4], 4294967168 }
 0x43f   :  { %637 = vsyncpa [#allocation3], 1 }
 0x440   :  { %638 = vsyncpa [#allocation6], 1 }
 0x441   :  { %639 = vsyncpa [#allocation9], 1 }
 0x442   :  { %640 = vsyncpa [#allocation4], 1 }

</bundles_post_ra>
